<compile_context>
chip_gen: v7x
topology: tpu7x:2x2x1
jax: 0.10.0
libtpu: 0.0.40
codegen_flags: <defaults>
</compile_context>

<pallas_src>
import functools

import jax
import jax.numpy as jnp
from jax import lax
from jax.experimental import pallas as pl
from jax.experimental.pallas import tpu as pltpu


def _head_transform_kernel(x_ref, w_ref, b_ref, g_ref, beta_ref, o_ref, *,
                           compute_dtype, approximate_gelu):
    # Grid-invariant (1, H) vectors -> f32 locals once per tile.
    b = b_ref[...].astype(jnp.float32)        # (1, H)
    g = g_ref[...].astype(jnp.float32)        # (1, H)
    beta = beta_ref[...].astype(jnp.float32)  # (1, H)

    # Activation tile arrives in its storage dtype; cast to the MXU operand
    # dtype on the VPU (free next to the MXU) instead of in a separate XLA op.
    x = x_ref[...]
    if x.dtype != compute_dtype:
        x = x.astype(compute_dtype)
    w = w_ref[...]                            # (H, H) == W^T, already compute_dtype

    if jnp.dtype(compute_dtype) == jnp.dtype(jnp.float32):
        # Exact path: force true f32 matmul (no bf16 multi-pass default).
        y = jnp.dot(x, w, preferred_element_type=jnp.float32,
                    precision=lax.Precision.HIGHEST)
    else:
        y = jnp.dot(x, w, preferred_element_type=jnp.float32)
    y = y + b

    if approximate_gelu:
        # tanh-GELU: transcendental lands on the EUP slot (cheap next to
        # MXU/VALU).  Off by default to match torch.nn.functional.gelu exactly.
        c = jnp.float32(0.7978845608028654)   # sqrt(2/pi)
        y = 0.5 * y * (1.0 + jnp.tanh(c * (y + 0.044715 * y * y * y)))
    else:
        # exact erf-GELU (torch default)
        y = 0.5 * y * (1.0 + lax.erf(y * jnp.float32(0.7071067811865476)))

    # LayerNorm over last dim, eps=1e-12, elementwise affine (f32).
    # Moment form: both reductions are launched directly from y (overlap with
    # the GELU VALU work) and gamma is folded into the inv-std multiplier.
    mean = jnp.mean(y, axis=-1, keepdims=True)
    mean_sq = jnp.mean(y * y, axis=-1, keepdims=True)
    var = jnp.maximum(mean_sq - mean * mean, 0.0)
    inv = lax.rsqrt(var + jnp.float32(1e-12))
    scale = g * inv                                      # (tm, H)
    o_ref[...] = ((y - mean) * scale + beta).astype(o_ref.dtype)


def _round_up(x, m):
    return (x + m - 1) // m * m


def _vmem_capacity_bytes():
    """Per-core VMEM capacity; conservative v7x fallback if query fails."""
    try:
        info = pltpu.get_tpu_info()
        for name in ("vmem_capacity_bytes", "vmem_size_bytes", "vmem_bytes"):
            cap = getattr(info, name, None)
            if cap:
                return int(cap)
    except Exception:
        pass
    return 64 * 1024 * 1024


def _choose_tm(M, H, x_itemsize, c_itemsize, o_itemsize, budget):
    """Largest row tile whose double-buffered footprint fits the VMEM budget."""
    def footprint(tm):
        return (2 * H * H * c_itemsize          # weight (double-buffered by Pallas)
                + 2 * tm * H * x_itemsize       # x tiles (double-buffered)
                + 2 * tm * H * o_itemsize       # out tiles (double-buffered)
                + 4 * tm * H * 4                # f32 epilogue intermediates
                + 6 * 8 * H * 4)                # bias / gamma / beta (padded)

    tm = 8
    for cand in (1024, 512, 256, 128, 64, 32, 16, 8):
        if footprint(cand) <= budget:
            tm = cand
            break
    # Never larger than the (8-row padded) problem.
    tm = min(tm, _round_up(M, 8))
    # v7x megacore: guarantee >= 2 grid steps when M allows, so both
    # TensorCores get work under dimension_semantics=("parallel",).
    if M >= 16 and pl.cdiv(M, tm) < 2:
        tm = _round_up(pl.cdiv(M, 2), 8)
    return max(tm, 8)


def syntax_bert_prediction_head_transform(x, weight, bias, gamma, beta, *,
                                          weight_t=None, tm=None,
                                          compute_dtype=jnp.bfloat16,
                                          out_dtype=None,
                                          approximate_gelu=False):
    """Fused LayerNorm(gelu(x @ W^T + b), eps=1e-12).

    x:      (B, S, H)
    weight: (H, H)  -- nn.Linear layout (out_features, in_features)
    bias, gamma, beta: (H,)
    weight_t:      optional pre-transposed/pre-cast W^T (cache at param load
                   time to keep the H*H transpose+convert off the hot path).
    compute_dtype: MXU operand dtype (default bf16: f32 accumulation and f32
                   epilogue are kept, tolerance ~1e-2).  Use jnp.float32 for
                   exact parity with a torch f32 forward.
    out_dtype:     output storage dtype (default: x.dtype).
    """
    B, S, H = x.shape
    M = B * S
    out_dtype = x.dtype if out_dtype is None else out_dtype
    compute_dtype = jnp.dtype(compute_dtype if compute_dtype is not None
                              else x.dtype)

    # Activations stream in their storage dtype, un-padded; the ragged last
    # row-block (if any) is handled by Pallas OOB read-padding / write-masking.
    x2 = x.reshape(M, H)

    if weight_t is None:
        # One-time parameter prep (cache this result in real deployments).
        weight_t = weight.T.astype(compute_dtype)
    elif weight_t.dtype != compute_dtype:
        weight_t = weight_t.astype(compute_dtype)
    b2 = bias.reshape(1, H).astype(jnp.float32)
    g2 = gamma.reshape(1, H).astype(jnp.float32)
    beta2 = beta.reshape(1, H).astype(jnp.float32)

    xsz = jnp.dtype(x2.dtype).itemsize
    csz = compute_dtype.itemsize
    osz = jnp.dtype(out_dtype).itemsize

    # Generation-aware VMEM budget: ~82% of per-core VMEM
    # (v5e/v6e 128 MiB -> ~105 MiB, v7x 64 MiB -> ~52 MiB of headroom kept).
    vmem_budget = int(_vmem_capacity_bytes() * 0.82)
    if tm is None:
        tm = _choose_tm(M, H, xsz, csz, osz, vmem_budget)
    else:
        tm = max(8, min(int(tm), _round_up(M, 8)))

    grid = (pl.cdiv(M, tm),)

    cost = pl.CostEstimate(
        flops=2 * M * H * H + 12 * M * H,
        transcendentals=M * H,
        bytes_accessed=M * H * (xsz + osz) + H * H * csz + 3 * H * 4,
    )

    kernel = functools.partial(_head_transform_kernel,
                               compute_dtype=compute_dtype,
                               approximate_gelu=approximate_gelu)

    out = pl.pallas_call(
        kernel,
        out_shape=jax.ShapeDtypeStruct((M, H), out_dtype),
        grid_spec=pltpu.PrefetchScalarGridSpec(
            num_scalar_prefetch=0,
            grid=grid,
            in_specs=[
                pl.BlockSpec((tm, H), lambda i: (i, 0)),   # x row tile
                pl.BlockSpec((H, H), lambda i: (0, 0)),    # W^T (index-invariant)
                pl.BlockSpec((1, H), lambda i: (0, 0)),    # bias
                pl.BlockSpec((1, H), lambda i: (0, 0)),    # LN gamma
                pl.BlockSpec((1, H), lambda i: (0, 0)),    # LN beta
            ],
            out_specs=pl.BlockSpec((tm, H), lambda i: (i, 0)),
        ),
        compiler_params=pltpu.CompilerParams(
            dimension_semantics=("parallel",),
            vmem_limit_bytes=vmem_budget,
        ),
        cost_estimate=cost,
    )(x2, weight_t, b2, g2, beta2)

    return out.reshape(B, S, H)


if __name__ == "__main__":
    # Small config consistent with the module (lane-aligned hidden size).
    B, S, H = 2, 8, 128

    key = jax.random.PRNGKey(0)
    kx, kw, kb, kg, kbeta = jax.random.split(key, 5)

    x = jax.random.normal(kx, (B, S, H), dtype=jnp.float32)
    weight = jax.random.normal(kw, (H, H), dtype=jnp.float32) * (1.0 / jnp.sqrt(H))
    bias = jax.random.normal(kb, (H,), dtype=jnp.float32) * 0.02
    gamma = 1.0 + 0.1 * jax.random.normal(kg, (H,), dtype=jnp.float32)
    beta = 0.1 * jax.random.normal(kbeta, (H,), dtype=jnp.float32)

    def reference(xr):
        # Plain JAX, exact erf GELU == torch default.
        y = xr @ weight.T + bias
        y = 0.5 * y * (1.0 + lax.erf(y / jnp.sqrt(2.0)))
        mu = jnp.mean(y, axis=-1, keepdims=True)
        var = jnp.mean((y - mu) ** 2, axis=-1, keepdims=True)
        return (y - mu) * lax.rsqrt(var + 1e-12) * gamma + beta

    ref = reference(x)

    # 1) Exact f32 path (precision=HIGHEST): tight parity with the reference.
    out_f32 = syntax_bert_prediction_head_transform(
        x, weight, bias, gamma, beta, compute_dtype=jnp.float32)
    out_f32 = jax.block_until_ready(out_f32)
    assert out_f32.shape == (B, S, H)
    assert jnp.allclose(out_f32, ref, atol=1e-4, rtol=1e-4)

    # 2) Default perf path: bf16 MXU operands (cast in-kernel), f32 accumulate
    #    + f32 epilogue, weight_t cached ahead of the call.
    w_t_cached = weight.T.astype(jnp.bfloat16)
    out_bf16 = syntax_bert_prediction_head_transform(
        x, weight, bias, gamma, beta, weight_t=w_t_cached)
    out_bf16 = jax.block_until_ready(out_bf16)
    assert out_bf16.shape == (B, S, H)
    assert jnp.allclose(out_bf16.astype(jnp.float32), ref, atol=5e-2, rtol=5e-2)

    # 3) Ragged M (B*S not a multiple of the row tile): exercises the
    #    no-pad / OOB-masked last block path.
    x_r = x[:, :7]                     # (2, 7, H) -> M = 14
    ref_r = reference(x_r)
    out_r = syntax_bert_prediction_head_transform(
        x_r, weight, bias, gamma, beta, compute_dtype=jnp.float32)
    out_r = jax.block_until_ready(out_r)
    assert out_r.shape == (2, 7, H)
    assert jnp.allclose(out_r, ref_r, atol=1e-4, rtol=1e-4)

    # 4) tanh-GELU perf variant (EUP slot) stays close to the exact reference.
    out_tanh = syntax_bert_prediction_head_transform(
        x, weight, bias, gamma, beta, approximate_gelu=True)
    out_tanh = jax.block_until_ready(out_tanh)
    assert jnp.allclose(out_tanh.astype(jnp.float32), ref, atol=5e-2, rtol=5e-2)

    print("KERNEL_OK")
</pallas_src>

<mosaic_0001>
module attributes {stable_mosaic.version = 11 : i64} {
  func.func @_head_transform_kernel(%arg0: i32, %arg1: memref<8x128xf32, #tpu.memory_space<vmem>>, %arg2: memref<128x128xf32, #tpu.memory_space<vmem>>, %arg3: memref<1x128xf32, #tpu.memory_space<vmem>>, %arg4: memref<1x128xf32, #tpu.memory_space<vmem>>, %arg5: memref<1x128xf32, #tpu.memory_space<vmem>>, %arg6: memref<8x128xf32, #tpu.memory_space<vmem>>) attributes {dimension_semantics = [#tpu.dimension_semantics<parallel>], iteration_bounds = array<i64: 2>, scalar_prefetch = 0 : i64, scratch_operands = 0 : i64, tpu.core_type = #tpu.core_type<tc>, window_params = [{transform_indices = @transform_0, window_bounds = array<i64: 8, 128>}, {pipeline_mode = #tpu.pipeline_mode<synchronous>, transform_indices = @transform_1, window_bounds = array<i64: 128, 128>}, {pipeline_mode = #tpu.pipeline_mode<synchronous>, transform_indices = @transform_2, window_bounds = array<i64: 1, 128>}, {pipeline_mode = #tpu.pipeline_mode<synchronous>, transform_indices = @transform_3, window_bounds = array<i64: 1, 128>}, {pipeline_mode = #tpu.pipeline_mode<synchronous>, transform_indices = @transform_4, window_bounds = array<i64: 1, 128>}, {transform_indices = @transform_5, window_bounds = array<i64: 8, 128>}]} {
    %c0 = arith.constant 0 : index
    %c0_0 = arith.constant 0 : index
    %0 = vector.load %arg3[%c0, %c0_0] : memref<1x128xf32, #tpu.memory_space<vmem>>, vector<1x128xf32>
    %c0_1 = arith.constant 0 : index
    %c0_2 = arith.constant 0 : index
    %1 = vector.load %arg4[%c0_1, %c0_2] : memref<1x128xf32, #tpu.memory_space<vmem>>, vector<1x128xf32>
    %c0_3 = arith.constant 0 : index
    %c0_4 = arith.constant 0 : index
    %2 = vector.load %arg5[%c0_3, %c0_4] : memref<1x128xf32, #tpu.memory_space<vmem>>, vector<1x128xf32>
    %c0_5 = arith.constant 0 : index
    %c0_6 = arith.constant 0 : index
    %3 = vector.load %arg1[%c0_5, %c0_6] : memref<8x128xf32, #tpu.memory_space<vmem>>, vector<8x128xf32>
    %c0_7 = arith.constant 0 : index
    %c0_8 = arith.constant 0 : index
    %4 = vector.load %arg2[%c0_7, %c0_8] : memref<128x128xf32, #tpu.memory_space<vmem>>, vector<128x128xf32>
    %cst = arith.constant dense<0.000000e+00> : vector<8x128xf32>
    %5 = tpu.matmul %3, %4, %cst {dimension_numbers = #tpu.dot_dimension_numbers<[1], [0], [0], [1], [0, 0, 1, 1], [], []>, precision = #tpu.contract_precision<fp32>} : vector<8x128xf32>, vector<128x128xf32>, vector<8x128xf32> -> vector<8x128xf32>
    %6 = vector.broadcast %0 : vector<1x128xf32> to vector<8x128xf32>
    %7 = arith.addf %5, %6 : vector<8x128xf32>
    %cst_9 = arith.constant 5.000000e-01 : f32
    %8 = vector.broadcast %cst_9 : f32 to vector<8x128xf32>
    %9 = arith.mulf %8, %7 : vector<8x128xf32>
    %cst_10 = arith.constant 0.707106769 : f32
    %10 = vector.broadcast %cst_10 : f32 to vector<8x128xf32>
    %11 = arith.mulf %7, %10 : vector<8x128xf32>
    %12 = math.erf %11 : vector<8x128xf32>
    %cst_11 = arith.constant 1.000000e+00 : f32
    %13 = vector.broadcast %cst_11 : f32 to vector<8x128xf32>
    %14 = arith.addf %13, %12 : vector<8x128xf32>
    %15 = arith.mulf %9, %14 : vector<8x128xf32>
    %cst_12 = arith.constant dense<0.000000e+00> : vector<8xf32>
    %16 = vector.multi_reduction <add>, %15, %cst_12 [1] : vector<8x128xf32> to vector<8xf32>
    %17 = vector.shape_cast %16 : vector<8xf32> to vector<8x1xf32>
    %cst_13 = arith.constant 1.280000e+02 : f32
    %18 = vector.broadcast %cst_13 : f32 to vector<8x1xf32>
    %19 = arith.divf %17, %18 : vector<8x1xf32>
    %20 = arith.mulf %15, %15 : vector<8x128xf32>
    %cst_14 = arith.constant dense<0.000000e+00> : vector<8xf32>
    %21 = vector.multi_reduction <add>, %20, %cst_14 [1] : vector<8x128xf32> to vector<8xf32>
    %22 = vector.shape_cast %21 : vector<8xf32> to vector<8x1xf32>
    %cst_15 = arith.constant 1.280000e+02 : f32
    %23 = vector.broadcast %cst_15 : f32 to vector<8x1xf32>
    %24 = arith.divf %22, %23 : vector<8x1xf32>
    %25 = arith.mulf %19, %19 : vector<8x1xf32>
    %26 = arith.subf %24, %25 : vector<8x1xf32>
    %cst_16 = arith.constant 0.000000e+00 : f32
    %27 = vector.broadcast %cst_16 : f32 to vector<8x1xf32>
    %28 = arith.maximumf %26, %27 : vector<8x1xf32>
    %cst_17 = arith.constant 9.99999996E-13 : f32
    %29 = vector.broadcast %cst_17 : f32 to vector<8x1xf32>
    %30 = arith.addf %28, %29 : vector<8x1xf32>
    %31 = math.rsqrt %30 : vector<8x1xf32>
    %32 = vector.broadcast %1 : vector<1x128xf32> to vector<8x128xf32>
    %33 = vector.broadcast %31 : vector<8x1xf32> to vector<8x128xf32>
    %34 = arith.mulf %32, %33 : vector<8x128xf32>
    %35 = vector.broadcast %19 : vector<8x1xf32> to vector<8x128xf32>
    %36 = arith.subf %15, %35 : vector<8x128xf32>
    %37 = arith.mulf %36, %34 : vector<8x128xf32>
    %38 = vector.broadcast %2 : vector<1x128xf32> to vector<8x128xf32>
    %39 = arith.addf %37, %38 : vector<8x128xf32>
    %c0_18 = arith.constant 0 : index
    %c0_19 = arith.constant 0 : index
    %40 = vector.load %arg6[%c0_18, %c0_19] : memref<8x128xf32, #tpu.memory_space<vmem>>, vector<8x128xf32>
    tpu.vector_store %arg6[%c0_18, %c0_19], %39 {strides = array<i32>} : memref<8x128xf32, #tpu.memory_space<vmem>>, vector<8x128xf32>,
    return
  }
  func.func @transform_0(%arg0: i32) -> (i32, i32) {
    %c0_i32 = arith.constant 0 : i32
    %c0_i32_0 = arith.constant 0 : i32
    return %arg0, %c0_i32 : i32, i32
  }
  func.func @transform_1(%arg0: i32) -> (i32, i32) {
    %c0_i32 = arith.constant 0 : i32
    %c0_i32_0 = arith.constant 0 : i32
    %c0_i32_1 = arith.constant 0 : i32
    return %c0_i32, %c0_i32_0 : i32, i32
  }
  func.func @transform_2(%arg0: i32) -> (i32, i32) {
    %c0_i32 = arith.constant 0 : i32
    %c0_i32_0 = arith.constant 0 : i32
    %c0_i32_1 = arith.constant 0 : i32
    return %c0_i32, %c0_i32_0 : i32, i32
  }
  func.func @transform_3(%arg0: i32) -> (i32, i32) {
    %c0_i32 = arith.constant 0 : i32
    %c0_i32_0 = arith.constant 0 : i32
    %c0_i32_1 = arith.constant 0 : i32
    return %c0_i32, %c0_i32_0 : i32, i32
  }
  func.func @transform_4(%arg0: i32) -> (i32, i32) {
    %c0_i32 = arith.constant 0 : i32
    %c0_i32_0 = arith.constant 0 : i32
    %c0_i32_1 = arith.constant 0 : i32
    return %c0_i32, %c0_i32_0 : i32, i32
  }
  func.func @transform_5(%arg0: i32) -> (i32, i32) {
    %c0_i32 = arith.constant 0 : i32
    %c0_i32_0 = arith.constant 0 : i32
    return %arg0, %c0_i32 : i32, i32
  }
}

</mosaic_0001>

<bundles_post_ra>
// kernel: tpu_custom_call.1
= control target key start
LH: loop header
LB: loop body
LE: loop exit
PB: predicated region body
PF: predicated region fallthrough
CT: control target
= control target key end

     0   :  { %10 = vsyncpa [#allocation3], 0  ;;  %s2227_s0 = inlined_call_operand.hbm [shape: f32[16,128], index: 0, kind: input, shape index: {}]   ;;  %s2228_s1 = inlined_call_operand.hbm [shape: f32[128,128], index: 1, kind: input, shape index: {}]   ;;  %s2229_s2 = inlined_call_operand.vmem [shape: f32[1,128], index: 2, kind: input, shape index: {}]   ;;  %s2230_s3 = inlined_call_operand.vmem [shape: f32[1,128], index: 3, kind: input, shape index: {}]   ;;  %s2231_s4 = inlined_call_operand.vmem [shape: f32[1,128], index: 4, kind: input, shape index: {}]   ;;  %s2232_s5 = inlined_call_operand.hbm [shape: f32[16,128], index: 5, kind: output, shape index: {}]  }
   0x1   :  { %12 = vsyncpa [#allocation3 + $0x1], 0 }
   0x2   :  { %13 = vsyncpa [#allocation6], 0 }
   0x3   :  { %14 = vsyncpa [#allocation4], 0 }
   0x4   :  { %16 = vsyncpa [#allocation4 + $0x1], 0  ;;  %s1768_s18 = smov 0   ;;  %s1770_s19 = smov 0  }
   0x5   :  { %s1772_s20 = smov 0   ;;  %s1774_s21 = smov 0  }
   0x6 LB: > { %s1789_s22 = sadd.s32 4294967295, %s1728_s21   ;;  %s1051_s23 = sadd.s32 4294967294, %s1728_s21   ;;  %s1728_s21 = sphi %s1774_s21, %s2252_s21   ;;  %s1724_s20 = sphi %s1772_s20, %s2251_s20   ;;  %s1720_s19 = sphi %s1770_s19, %s2250_s19   ;;  %s1716_s18 = sphi %s1768_s18, %s2249_s18  }
   0x7   : > { %p42_p0 = scmp.ne.s32.totalorder %s1720_s19, %s1716_s18  ;;  %p2233_p1 = scmp.eq.s32.totalorder %s1789_s22, 0 }
   0x8   : > { %p156_p3 = scmp.eq.s32.totalorder %s1051_s23, 1  ;;  %p1052_p5 = scmp.ge.s32.totalorder %s1728_s21, 1 }
   0x9   : > { %p1798_p4 = por %p2233_p1, %p42_p0  ;;  %p163_p7 = scmp.lt.s32.totalorder %s1728_s21, 3 }
   0xa   : > { %p1803_p6 = por %p156_p3, %p42_p0  ;;  %s1730_s27 = smov [#allocation5]  }
   0xb   : > { %s2236_s24 = scalar_select %p1798_p4, 1, 0 }
   0xc   : > { %s2237_s25 = scalar_select %p1803_p6, 1, 0 }
   0xd   : > { %p1808_p8 = pnand %p1052_p5, %p163_p7  ;;  %s175_s28 = sshll.u32 %s1730_s27, 4  ;;  %s1812_s28 = int_to_ptr.vmem [resolvable:$true] %s175_s28 }
   0xe   : > { %s1824_s30 = sadd.s32 1, %s1728_s21   ;;  %s29_s6 = sadd.s32 1, %s1724_s20 }
   0xf   : > { %s2238_s26 = scalar_select %p1808_p8, 1, 0 }
  0x10   : > { %p1542_p9 = pneg %p1808_p8  ;;  %s26_s7 = ssub.s32 %s1728_s21, %s1824_s30 }
  0x11   : > { %s1600_s10 = scalar_lea.hbm %s2228_s1, 2048 }
  0x12   : > { %p1819_p11 = pnand %p1542_p9, %p2233_p1  ;;  %p1601_p12 = scmp.ne.s32.totalorder %s2228_s1, %s1600_s10 }
  0x13   : > { %p1607_p5 = scmp.lt.u32.totalorder %s1600_s10, %s2228_s1 }
  0x14   : > { %p1602_p13 = pneg %p1819_p11 }
  0x16   : > { %p1603_p0 = pnand %p1602_p13, %p1601_p12 }
  0x18   : > { %p1604_p3 = pneg %p1603_p0 }
  0x1a   : > { %p1609_p7 = pnand %p1607_p5, %p1604_p3 }
  0x1c   : > { %1612 = shalt.err (!%p1609_p7)
}
  0x1d   : > { %s1613_s15 = scalar_lea.vmem %s1812_s28, 2048  ;;  %p1621_p2 = scmp.lt.s32.totalorder %s1812_s28, %s1812_s28 }
  0x1e   : > { %p1614_p9 = scmp.ne.s32.totalorder %s1812_s28, %s1613_s15  ;;  %p1622_p6 = scmp.lt.s32.totalorder %s1613_s15, %s1613_s15 }
  0x20   : > { %p1616_p10 = pnand %p1614_p9, %p1602_p13  ;;  %p1623_p4 = por %p1622_p6, %p1621_p2 }
  0x22   : > { %p1617_p1 = pneg %p1616_p10 }
  0x24   : > { %p1624_p8 = pnand %p1623_p4, %p1617_p1 }
  0x26   : > { %1627 = shalt.err (!%p1624_p8)
}
  0x27   : > { %s1731_s16 = smov 128   ;;  %s1732_s17 = smov 8  }
  0x28   : > { %1545 = dma.hbm_to_vmem [thread:$0]  (!%p1819_p11), %s2228_s1, 2048, %s1812_s28, [#allocation6], %s1731_s16, %s1731_s16, %s1732_s17  }
  0x29   : > { %p27_p2 = scmp.eq.s32.totalorder %s26_s7, 0  ;;  %p36_p1 = scmp.ne.s32.totalorder %s1724_s20, %s1720_s19 }
  0x2a   : > { %p37_p4 = scmp.eq.s32.totalorder %s1728_s21, 0  ;;  %p1555_p6 = scmp.lt.s32.totalorder %s1728_s21, 2 }
  0x2b   : > { %s1855_s8 = scalar_select %p27_p2, %s1724_s20, %s29_s6  }
  0x2c   : > { %p38_p8 = por %p37_p4, %p36_p1  ;;  %p2240_p10 = scmp.eq.s32.totalorder %s1789_s22, 1 }
  0x2d   : > { %s198_s10 = sand.u32 1, %s1724_s20   ;;  %s1056_s11 = sshll.u32 %s1728_s21, 7 }
  0x2e   : > { %p1859_p12 = por %p2240_p10, %p36_p1  ;;  %s1055_s12 = sshll.u32 %s198_s10, 3 }
  0x2f   : > { %s1868_s14 = scalar_lea.hbm %s2227_s0, %s1056_s11  ;;  %s202_s28 = scalar_lea.vmem [#allocation2], %s1055_s12 }
  0x30   : > { %s209_s6 = sshll.u32 %s202_s28, 4  ;;  %p1870_p11 = pnand %p1555_p6, %p38_p8  ;;  %s1874_s6 = int_to_ptr.vmem [resolvable:$true] %s209_s6 }
  0x31   : > { %s199_s15 = scalar_lea.sflag [#allocation3], %s198_s10  ;;  %s1628_s16 = scalar_lea.hbm %s1868_s14, 128 }
  0x32   : > { %p1629_p13 = scmp.ne.s32.totalorder %s1868_s14, %s1628_s16  ;;  %p1630_p0 = pneg %p1870_p11 }
  0x33   : > { %s1633_s27 = scalar_lea.hbm %s2227_s0, 256  ;;  %p1634_p7 = scmp.lt.u32.totalorder %s1868_s14, %s2227_s0 }
  0x34   : > { %p1631_p3 = pnand %p1630_p0, %p1629_p13  ;;  %p1635_p9 = scmp.lt.u32.totalorder %s1633_s27, %s1628_s16 }
  0x35   : > { %p1637_p1 = scmp.lt.u32.totalorder %s1628_s16, %s1868_s14 }
  0x36   : > { %p1632_p5 = pneg %p1631_p3  ;;  %p1636_p2 = por %p1635_p9, %p1634_p7 }
  0x38   : > { %p1638_p4 = por %p1637_p1, %p1636_p2 }
  0x3a   : > { %p1639_p6 = pnand %p1638_p4, %p1632_p5 }
  0x3c   : > { %1642 = shalt.err (!%p1639_p6)
}
  0x3d   : > { %s1643_s10 = scalar_lea.vmem %s1874_s6, 128  ;;  %s1733_s29 = smov [#allocation2]  }
  0x3e   : > { %p1644_p8 = scmp.ne.s32.totalorder %s1874_s6, %s1643_s10  ;;  %s1648_s13 = sshll.u32 %s1733_s29, 4  ;;  %s1649_s13 = int_to_ptr.vmem [resolvable:$false] %s1648_s13 }
  0x3f   : > { %s1650_s28 = scalar_lea.vmem %s1649_s13, 256  ;;  %p1651_p3 = scmp.lt.s32.totalorder %s1874_s6, %s1649_s13 }
  0x40   : > { %p1646_p10 = pnand %p1644_p8, %p1630_p0  ;;  %p1652_p7 = scmp.lt.s32.totalorder %s1650_s28, %s1643_s10 }
  0x42   : > { %p1647_p13 = pneg %p1646_p10  ;;  %p1653_p9 = por %p1652_p7, %p1651_p3 }
  0x44   : > { %p1654_p2 = pnand %p1653_p9, %p1647_p13 }
  0x46   : > { %1657 = shalt.err (!%p1654_p2)
}
  0x47   : > { %1549 = dma.hbm_to_vmem [thread:$0]  (!%p1870_p11), %s1868_s14, 128, %s1874_s6, %s199_s15  }
  0x48   : > { %p2243_p5 = scmp.ne.s32.totalorder %s2238_s26, 0 }
  0x49   : > { %s1904_s16 = sand.u32 (!%p2243_p5), 1, %s1720_s19   ;;  %p2244_p0 = scmp.ne.s32.totalorder (!%p2243_p5), %s2236_s24, 0 }
  0x4a   : > { %218 = sbr.rel (%p2243_p5) target bundleno = 603 (0x25b), region = 40  ;;  %s1058_s17 = sshll.u32 (!%p2243_p5), %s1904_s16, 3 }
  0x4b   : > { %s221_s23 = scalar_lea.sflag (!%p2243_p5), [#allocation3], %s1904_s16  ;;  %s1910_s27 = scalar_lea.vmem (!%p2243_p5), [#allocation2], %s1058_s17 }
  0x51   : > { %1703 = dma.done.wait (%p2244_p0), %s221_s23, 128  }
  0x52   : > { %1705 = vsyncadd (%p2244_p0), %s221_s23, 4294967168  ;;  %p2245_p11 = scmp.eq.s32.totalorder %s1789_s22, 0 }
  0x54   : > { %1707 = dma.done.wait (%p2245_p11), [#allocation6], 2048   ;;  %p2246_p1 = pmov %p2245_p11 }
  0x55   : > { %v1734_v0 = vmov 0.0|0.0   ;;  %vm1735_vm0 = vmmov 0   ;;  %v1736_v1 = vmov 0.0   ;;  %v259_v2 = vld [vmem:[#allocation5] sm:$0xff]  ;;  %v260_v3 = vld [vmem:[#allocation5 + $0x8] sm:$0xff]  ;;  %v261_v4 = vld [vmem:[#allocation5 + $0x10] sm:$0xff] }
  0x56   : > { %1709 = vsyncadd (%p2246_p1), [#allocation6], 4294965248  ;;  %1380 = vmatprep.subr.bf16.mxu1 %v1734_v0  ;;  %1452 = vmatprep.subr.bf16.mxu0 %v1734_v0  ;;  %v282_v5 = vand.u32 4294901760, %v259_v2  ;;  %v285_v6 = vand.u32 4294901760, %v260_v3  ;;  %v262_v7 = vld [vmem:[#allocation5 + $0x18] sm:$0xff]  ;;  %v288_v8 = vand.u32 4294901760, %v261_v4 }
  0x57   : > { %1202 = vmatprep.mubr.msk.f32.mxu1 %vm1735_vm0, %v1736_v1  ;;  %1307 = vmatprep.mubr.msk.f32.mxu0 %vm1735_vm0, %v1736_v1  ;;  %v291_v9 = vand.u32 4294901760, %v262_v7  ;;  %v263_v10 = vld [vmem:[#allocation5 + $0x20] sm:$0xff]  ;;  %v264_v11 = vld [vmem:[#allocation5 + $0x28] sm:$0xff]  ;;  %v265_v16 = vld [vmem:[#allocation5 + $0x30] sm:$0xff]  ;;  %s1065_s11 = sshll.u32 %s1789_s22, 7  ;;  %s254_s12 = scalar_lea.vmem [#allocation7], %s1058_s17 }
  0x58   : > { %v1926_v12 = vpack.c.bf16 %v285_v6, %v282_v5  ;;  %v294_v14 = vand.u32 4294901760, %v263_v10  ;;  %v297_v15 = vand.u32 4294901760, %v264_v11  ;;  %v266_v17 = vld [vmem:[#allocation5 + $0x38] sm:$0xff]  ;;  %v300_v19 = vand.u32 4294901760, %v265_v16  ;;  %v1940_v21 = vld [vmem:[#allocation5 + $0x40] sm:$0xff]  ;;  %v1942_v22 = vld [vmem:[#allocation5 + $0x48] sm:$0xff]  ;;  %s2183_s28 = scalar_lea.hbm %s2232_s5, %s1065_s11 }
  0x59   : > { %v1930_v13 = vpack.c.bf16 %v291_v9, %v288_v8  ;;  %v303_v20 = vand.u32 4294901760, %v266_v17  ;;  %v306_v24 = vand.u32 4294901760, %v1940_v21  ;;  %v309_v25 = vand.u32 4294901760, %v1942_v22  ;;  %v258_v26 = vld [vmem:[%s1910_s27] sm:$0xff]  ;;  %v1969_v35 = vld [vmem:[#allocation5 + $0x60] sm:$0xff]  ;;  %v1973_v36 = vld [vmem:[#allocation5 + $0x68] sm:$0xff] }
  0x5a   : > { %1382 = vmatpush3.bf16.msra.mxu1 %v1926_v12  ;;  %1454 = vmatpush3.bf16.msra.mxu0 %v1926_v12  ;;  %v1936_v18 = vpack.c.bf16 %v297_v15, %v294_v14  ;;  %v1953_v27 = vld [vmem:[#allocation5 + $0x50] sm:$0xff]  ;;  %v1955_v28 = vld [vmem:[#allocation5 + $0x58] sm:$0xff]  ;;  %v1957_v29 = vsub.f32 %v259_v2, %v282_v5  ;;  %v1959_v30 = vand.u32 4294901760, %v258_v26  ;;  %v1961_v31 = vsub.f32 %v260_v3, %v285_v6  ;;  %s971_s10 = sshll.u32 %s254_s12, 4  ;;  %s958_s23 = scalar_lea.sflag [#allocation4], %s1904_s16  ;;  %s2185_s10 = int_to_ptr.vmem [resolvable:$true] %s971_s10 }
  0x5b   : > { %1383 = vmatprep.subr.bf16.mxu1 %v1734_v0  ;;  %1455 = vmatprep.subr.bf16.mxu0 %v1734_v0  ;;  %v1946_v23 = vpack.c.bf16 %v303_v20, %v300_v19  ;;  %v1965_v32 = vpack.c.bf16 %v309_v25, %v306_v24  ;;  %v312_v33 = vand.u32 4294901760, %v1953_v27  ;;  %v315_v34 = vand.u32 4294901760, %v1955_v28  ;;  %v1992_v43 = vld [vmem:[#allocation5 + $0x70] sm:$0xff]  ;;  %v1994_v44 = vld [vmem:[#allocation5 + $0x78] sm:$0xff]  ;;  %s1658_s27 = scalar_lea.vmem %s2185_s10, 128  ;;  %s1737_s22 = smov [#allocation7]  }
  0x5c   : > { %v1975_v37 = vsub.f32 %v261_v4, %v288_v8  ;;  %v1977_v38 = vsub.f32 %v262_v7, %v291_v9  ;;  %v318_v39 = vand.u32 4294901760, %v1969_v35  ;;  %v1981_v40 = vsub.f32 %v258_v26, %v1959_v30  ;;  %p1659_p4 = scmp.ne.s32.totalorder %s2185_s10, %s1658_s27  ;;  %s1662_s17 = sshll.u32 %s1737_s22, 4  ;;  %s1663_s17 = int_to_ptr.vmem [resolvable:$false] %s1662_s17 }
  0x5d   : > { %v1989_v41 = vpack.c.bf16 %v315_v34, %v312_v33  ;;  %v321_v42 = vand.u32 4294901760, %v1973_v36  ;;  %v375_v45 = vand.u32 4294901760, %v1957_v29  ;;  %v382_v46 = vand.u32 4294901760, %v1961_v31  ;;  %s1664_s24 = scalar_lea.vmem %s1663_s17, 256  ;;  %p1665_p10 = scmp.lt.s32.totalorder %s2185_s10, %s1663_s17 }
  0x5e   : > { %1385 = vmatpush3.bf16.msra.mxu1 %v1930_v13  ;;  %1457 = vmatpush3.bf16.msra.mxu0 %v1930_v13  ;;  %v2000_v47 = vsub.f32 %v263_v10, %v294_v14  ;;  %v2002_v48 = vsub.f32 %v264_v11, %v297_v15  ;;  %v324_v49 = vand.u32 4294901760, %v1992_v43  ;;  %v327_v50 = vand.u32 4294901760, %v1994_v44  ;;  %p1660_p6 = pnand %p1659_p4, %p1859_p12  ;;  %p1666_p13 = scmp.lt.s32.totalorder %s1664_s24, %s1658_s27 }
  0x5f   : > { %1386 = vmatprep.subr.bf16.mxu1 %v1734_v0  ;;  %1458 = vmatprep.subr.bf16.mxu0 %v1734_v0  ;;  %v364_v51 = vand.u32 4294901760, %v1981_v40  ;;  %v389_v52 = vand.u32 4294901760, %v1975_v37  ;;  %v2014_v53 = vpack.c.bf16 %v321_v42, %v318_v39  ;;  %v376_v54 = vsub.f32 %v1957_v29, %v375_v45 }
  0x60   : > { %v383_v55 = vsub.f32 %v1961_v31, %v382_v46  ;;  %v396_v56 = vand.u32 4294901760, %v1977_v38  ;;  %v2021_v57 = vsub.f32 %v265_v16, %v300_v19  ;;  %v2023_v58 = vsub.f32 %v266_v17, %v303_v20  ;;  %p1661_p8 = pneg %p1660_p6  ;;  %p1667_p3 = por %p1666_p13, %p1665_p10 }
  0x61   : > { %v365_v59 = vsub.f32 %v1981_v40, %v364_v51  ;;  %v390_v60 = vsub.f32 %v1975_v37, %v389_v52  ;;  %v403_v61 = vand.u32 4294901760, %v2000_v47  ;;  %v410_v62 = vand.u32 4294901760, %v2002_v48 }
  0x62   : > { %1388 = vmatpush3.bf16.msra.mxu1 %v1936_v18  ;;  %1460 = vmatpush3.bf16.msra.mxu0 %v1936_v18  ;;  %v2035_v63 = vpack.c.bf16 %v327_v50, %v324_v49  ;;  %v377_v2 = vand.u32 4294901760, %v376_v54  ;;  %v384_v3 = vand.u32 4294901760, %v383_v55  ;;  %v397_v4 = vsub.f32 %v1977_v38, %v396_v56  ;;  %p1668_p7 = pnand %p1667_p3, %p1661_p8 }
  0x63   : > { %1389 = vmatprep.subr.bf16.mxu1 %v1734_v0  ;;  %1461 = vmatprep.subr.bf16.mxu0 %v1734_v0  ;;  %v2041_v5 = vsub.f32 %v1940_v21, %v306_v24  ;;  %v2044_v6 = vsub.f32 %v1942_v22, %v309_v25  ;;  %v1477_v7 = vpack.c.bf16 %v382_v46, %v375_v45  ;;  %v366_v8 = vand.u32 4294901760, %v365_v59 }
  0x64   : > { %v391_v9 = vand.u32 4294901760, %v390_v60  ;;  %v404_v10 = vsub.f32 %v2000_v47, %v403_v61  ;;  %v411_v11 = vsub.f32 %v2002_v48, %v410_v62  ;;  %v1405_v14 = vpack.c.bf16 %v384_v3, %v377_v2 }
  0x65   : > { %v398_v15 = vand.u32 4294901760, %v397_v4  ;;  %v417_v16 = vand.u32 4294901760, %v2021_v57  ;;  %v424_v17 = vand.u32 4294901760, %v2023_v58  ;;  %v2057_v19 = vsub.f32 %v1953_v27, %v312_v33 }
  0x66   : > { %1391 = vmatpush3.bf16.msra.mxu1 %v1946_v23  ;;  %1463 = vmatpush3.bf16.msra.mxu0 %v1946_v23  ;;  %v2062_v20 = vsub.f32 %v1955_v28, %v315_v34  ;;  %v1480_v21 = vpack.c.bf16 %v396_v56, %v389_v52  ;;  %v405_v22 = vand.u32 4294901760, %v404_v10  ;;  %v412_v24 = vand.u32 4294901760, %v411_v11 }
  0x67   : > { %1392 = vmatprep.subr.bf16.mxu1 %v1734_v0  ;;  %1464 = vmatprep.subr.bf16.mxu0 %v1734_v0  ;;  %v431_v25 = vand.u32 4294901760, %v2041_v5  ;;  %v1408_v26 = vpack.c.bf16 %v398_v15, %v391_v9  ;;  %v418_v45 = vsub.f32 %v2021_v57, %v417_v16  ;;  %v425_v27 = vsub.f32 %v2023_v58, %v424_v17 }
  0x68   : > { %v438_v33 = vand.u32 4294901760, %v2044_v6  ;;  %v2073_v28 = vsub.f32 %v1969_v35, %v318_v39  ;;  %v2078_v34 = vsub.f32 %v1973_v36, %v321_v42  ;;  %v1411_v46 = vpack.c.bf16 %v412_v24, %v405_v22 }
  0x69   : > { %v432_v52 = vsub.f32 %v2041_v5, %v431_v25  ;;  %v445_v54 = vand.u32 4294901760, %v2057_v19  ;;  %v419_v35 = vand.u32 4294901760, %v418_v45  ;;  %v426_v39 = vand.u32 4294901760, %v425_v27 }
  0x6a   : > { %1394 = vmatpush3.bf16.msra.mxu1 %v1965_v32  ;;  %1466 = vmatpush3.bf16.msra.mxu0 %v1965_v32  ;;  %v439_v55 = vsub.f32 %v2044_v6, %v438_v33  ;;  %v452_v36 = vand.u32 4294901760, %v2062_v20  ;;  %v2093_v42 = vsub.f32 %v1992_v43, %v324_v49  ;;  %v2098_v56 = vsub.f32 %v1994_v44, %v327_v50 }
  0x6b   : > { %1395 = vmatprep.subr.bf16.mxu1 %v1734_v0  ;;  %1467 = vmatprep.subr.bf16.mxu0 %v1734_v0  ;;  %v1486_v59 = vpack.c.bf16 %v424_v17, %v417_v16  ;;  %v433_v60 = vand.u32 4294901760, %v432_v52  ;;  %v1414_v2 = vpack.c.bf16 %v426_v39, %v419_v35  ;;  %v466_v43 = vand.u32 4294901760, %v2078_v34 }
  0x6c   : > { %v440_v3 = vand.u32 4294901760, %v439_v55  ;;  %v453_v4 = vsub.f32 %v2062_v20, %v452_v36  ;;  %v1489_v44 = vpack.c.bf16 %v438_v33, %v431_v25  ;;  %v480_v11 = vand.u32 4294901760, %v2098_v56 }
  0x6d   : > { %v467_v10 = vsub.f32 %v2078_v34, %v466_v43 }
  0x6e   : > { %1397 = vmatpush3.bf16.msra.mxu1 %v1989_v41  ;;  %1469 = vmatpush3.bf16.msra.mxu0 %v1989_v41  ;;  %v454_v9 = vand.u32 4294901760, %v453_v4  ;;  %v481_v22 = vsub.f32 %v2098_v56, %v480_v11 }
  0x6f   : > { %1398 = vmatprep.subr.bf16.mxu1 %v1734_v0  ;;  %1470 = vmatprep.subr.bf16.mxu0 %v1734_v0  ;;  %v468_v17 = vand.u32 4294901760, %v467_v10 }
  0x70   : > { %v482_v45 = vand.u32 4294901760, %v481_v22 }
  0x72   : > { %1400 = vmatpush3.bf16.msra.mxu1 %v2014_v53  ;;  %1472 = vmatpush3.bf16.msra.mxu0 %v2014_v53 }
  0x73   : > { %1401 = vmatprep.subr.bf16.mxu1 %v1734_v0  ;;  %1473 = vmatprep.subr.bf16.mxu0 %v1734_v0 }
  0x76   : > { %1403 = vmatpush3.bf16.msra.mxu1 %v2035_v63  ;;  %1475 = vmatpush3.bf16.msra.mxu0 %v2035_v63 }
  0x77   : > { %1404 = vmatprep.subr.bf16.mxu1 %v1734_v0  ;;  %1476 = vmatprep.subr.bf16.mxu0 %v1734_v0 }
  0x79   : > { %1203 = vmatmul.mubr.f32.vlgmr.msra.gmra.mrb[0].mxu1 %v366_v8  ;;  %1308 = vmatmul.mubr.f32.vlgmr.msra.gmra.mrb[0].mxu0 %v364_v51  ;;  %v1483_v51 = vpack.c.bf16 %v410_v62, %v403_v61  ;;  %v446_v61 = vsub.f32 %v2057_v19, %v445_v54  ;;  %v459_v62 = vand.u32 4294901760, %v2073_v28  ;;  %v1417_v8 = vpack.c.bf16 %v440_v3, %v433_v60 }
  0x7a   : > { %1406 = vmatpush3.bf16.msra.mxu1 %v1405_v14  ;;  %1478 = vmatpush3.bf16.msra.mxu0 %v1477_v7  ;;  %v473_v7 = vand.u32 4294901760, %v2093_v42  ;;  %v1492_v14 = vpack.c.bf16 %v452_v36, %v445_v54  ;;  %v1062_v54 = vld [vmem:[%s2230_s3] ss:$0 sm:$0xff] }
  0x7b   : > { %1407 = vmatprep.subr.bf16.mxu1 %v1734_v0  ;;  %1479 = vmatprep.subr.bf16.mxu0 %v1734_v0  ;;  %v447_v49 = vand.u32 4294901760, %v446_v61  ;;  %v460_v50 = vsub.f32 %v2073_v28, %v459_v62  ;;  %v1495_v25 = vpack.c.bf16 %v466_v43, %v459_v62  ;;  %v1063_v36 = vld [vmem:[%s2231_s4] ss:$0 sm:$0xff] }
  0x7c   : > { %1237 = vmatprep.mubr.msk.f32.mxu1 %vm1735_vm0, %v1736_v1  ;;  %1342 = vmatprep.mubr.msk.f32.mxu0 %vm1735_vm0, %v1736_v1  ;;  %v1498_v33 = vpack.c.bf16 %v480_v11, %v473_v7 }
  0x7d   : > { %v461_v15 = vand.u32 4294901760, %v460_v50  ;;  %v1420_v16 = vpack.c.bf16 %v454_v9, %v447_v49 }
  0x7e   : > { %1409 = vmatpush3.bf16.msra.mxu1 %v1408_v26  ;;  %1481 = vmatpush3.bf16.msra.mxu0 %v1480_v21  ;;  %v474_v21 = vsub.f32 %v2093_v42, %v473_v7 }
  0x7f   : > { %1410 = vmatprep.subr.bf16.mxu1 %v1734_v0  ;;  %1482 = vmatprep.subr.bf16.mxu0 %v1734_v0  ;;  %v1423_v24 = vpack.c.bf16 %v468_v17, %v461_v15 }
  0x80   : > { %v475_v26 = vand.u32 4294901760, %v474_v21 }
  0x82   : > { %1412 = vmatpush3.bf16.msra.mxu1 %v1411_v46  ;;  %1484 = vmatpush3.bf16.msra.mxu0 %v1483_v51  ;;  %v1426_v27 = vpack.c.bf16 %v482_v45, %v475_v26  ;;  %v1429_v46 = vpack.c.bf16 %v1961_v31, %v1957_v29  ;;  %v1432_v51 = vpack.c.bf16 %v1977_v38, %v1975_v37  ;;  %v1061_v31 = vld [vmem:[%s2229_s2] ss:$0 sm:$0xff] }
  0x83   : > { %1413 = vmatprep.subr.bf16.mxu1 %v1734_v0  ;;  %1485 = vmatprep.subr.bf16.mxu0 %v1734_v0  ;;  %v1435_v29 = vpack.c.bf16 %v2002_v48, %v2000_v47 }
  0x86   : > { %1415 = vmatpush3.bf16.msra.mxu1 %v1414_v2  ;;  %1487 = vmatpush3.bf16.msra.mxu0 %v1486_v59 }
  0x87   : > { %1416 = vmatprep.subr.bf16.mxu1 %v1734_v0  ;;  %1488 = vmatprep.subr.bf16.mxu0 %v1734_v0 }
  0x8a   : > { %1418 = vmatpush3.bf16.msra.mxu1 %v1417_v8  ;;  %1490 = vmatpush3.bf16.msra.mxu0 %v1489_v44 }
  0x8b   : > { %1419 = vmatprep.subr.bf16.mxu1 %v1734_v0  ;;  %1491 = vmatprep.subr.bf16.mxu0 %v1734_v0 }
  0x8e   : > { %1421 = vmatpush3.bf16.msra.mxu1 %v1420_v16  ;;  %1493 = vmatpush3.bf16.msra.mxu0 %v1492_v14 }
  0x8f   : > { %1422 = vmatprep.subr.bf16.mxu1 %v1734_v0  ;;  %1494 = vmatprep.subr.bf16.mxu0 %v1734_v0 }
  0x92   : > { %1424 = vmatpush3.bf16.msra.mxu1 %v1423_v24  ;;  %1496 = vmatpush3.bf16.msra.mxu0 %v1495_v25 }
  0x93   : > { %1425 = vmatprep.subr.bf16.mxu1 %v1734_v0  ;;  %1497 = vmatprep.subr.bf16.mxu0 %v1734_v0 }
  0x96   : > { %1427 = vmatpush3.bf16.msra.mxu1 %v1426_v27  ;;  %1499 = vmatpush3.bf16.msra.mxu0 %v1498_v33 }
  0x97   : > { %1428 = vmatprep.subr.bf16.mxu1 %v1734_v0  ;;  %1500 = vmatprep.subr.bf16.mxu0 %v1734_v0 }
  0x99   : > { %1238 = vmatmul.mubr.f32.vlgmr.msra.gmra.mrb[0].mxu1 %v1959_v30  ;;  %1343 = vmatmul.mubr.f32.vlgmr.msra.gmra.mrb[0].mxu0 %v1959_v30 }
  0x9a   : > { %1430 = vmatpush3.bf16.msra.mxu1 %v1429_v46  ;;  %1502 = vmatpush3.bf16.msra.mxu0 %v1926_v12  ;;  %v1438_v12 = vpack.c.bf16 %v2023_v58, %v2021_v57 }
  0x9b   : > { %1431 = vmatprep.subr.bf16.mxu1 %v1734_v0  ;;  %1503 = vmatprep.subr.bf16.mxu0 %v1734_v0 }
  0x9c   : > { %1272 = vmatprep.mubr.msk.f32.mxu1 %vm1735_vm0, %v1736_v1  ;;  %1377 = vmatprep.mubr.msk.f32.mxu0 %vm1735_vm0, %v1736_v1  ;;  %v1441_v1 = vpack.c.bf16 %v2044_v6, %v2041_v5 }
  0x9e   : > { %1433 = vmatpush3.bf16.msra.mxu1 %v1432_v51  ;;  %1505 = vmatpush3.bf16.msra.mxu0 %v1930_v13  ;;  %v1444_v13 = vpack.c.bf16 %v2062_v20, %v2057_v19 }
  0x9f   : > { %1434 = vmatprep.subr.bf16.mxu1 %v1734_v0  ;;  %1506 = vmatprep.subr.bf16.mxu0 %v1734_v0 }
  0xa2   : > { %1436 = vmatpush3.bf16.msra.mxu1 %v1435_v29  ;;  %1508 = vmatpush3.bf16.msra.mxu0 %v1936_v18  ;;  %v1447_v18 = vpack.c.bf16 %v2078_v34, %v2073_v28 }
  0xa3   : > { %1437 = vmatprep.subr.bf16.mxu1 %v1734_v0  ;;  %1509 = vmatprep.subr.bf16.mxu0 %v1734_v0 }
  0xa6   : > { %1439 = vmatpush3.bf16.msra.mxu1 %v1438_v12  ;;  %1511 = vmatpush3.bf16.msra.mxu0 %v1946_v23  ;;  %v1450_v23 = vpack.c.bf16 %v2098_v56, %v2093_v42 }
  0xa7   : > { %1440 = vmatprep.subr.bf16.mxu1 %v1734_v0  ;;  %1512 = vmatprep.subr.bf16.mxu0 %v1734_v0 }
  0xaa   : > { %1442 = vmatpush3.bf16.msra.mxu1 %v1441_v1  ;;  %1514 = vmatpush3.bf16.msra.mxu0 %v1965_v32 }
  0xab   : > { %1443 = vmatprep.subr.bf16.mxu1 %v1734_v0  ;;  %1515 = vmatprep.subr.bf16.mxu0 %v1734_v0 }
  0xae   : > { %1445 = vmatpush3.bf16.msra.mxu1 %v1444_v13  ;;  %1517 = vmatpush3.bf16.msra.mxu0 %v1989_v41 }
  0xaf   : > { %1446 = vmatprep.subr.bf16.mxu1 %v1734_v0  ;;  %1518 = vmatprep.subr.bf16.mxu0 %v1734_v0 }
  0xb2   : > { %1448 = vmatpush3.bf16.msra.mxu1 %v1447_v18  ;;  %1520 = vmatpush3.bf16.msra.mxu0 %v2014_v53 }
  0xb3   : > { %1449 = vmatprep.subr.bf16.mxu1 %v1734_v0  ;;  %1521 = vmatprep.subr.bf16.mxu0 %v1734_v0 }
  0xb6   : > { %1451 = vmatpush3.bf16.msra.mxu1 %v1450_v23  ;;  %1523 = vmatpush3.bf16.msra.mxu0 %v2035_v63 }
  0xb9   : > { %1273 = vmatmul.mubr.f32.vlgmr.msra.gmra.mrb[0].mxu1 %v1981_v40  ;;  %1378 = vmatmul.mubr.f32.vlgmr.msra.gmra.mrb[0].mxu0 %v1959_v30 }
 0x18c   : > { %v623_v32 = vpop.f32.mrb[0].mxu1  ;;  %v918_v37 = vpop.f32.mrb[0].mxu0 }
 0x18d   : > { %v1524_v38 = vadd.f32 %v1061_v31, %v623_v32  ;;  %v1274_v41 = vpop.f32.mrb[1].mxu1  ;;  %v1379_v47 = vpop.f32.mrb[1].mxu0 }
 0x18f   : > { %v1525_v48 = vadd.f32 %v1524_v38, %v918_v37 }
 0x191   : > { %v923_v53 = vmul.f32 0.70710677, %v1525_v48  ;;  %v922_v57 = vmul.f32 0.5, %v1525_v48 }
 0x193   : > { %1596 = verf.f32 %v923_v53 }
 0x19d   : > { %v1597_v0 = vpop.eup %1596 }
 0x19e   : > { %v925_v58 = vadd.f32 1.0, %v1597_v0 }
 0x1a0   : > { %v926_v63 = vmul.f32 %v925_v58, %v922_v57 }
 0x1a2   : > { %927 = vadd.xlane.f32.xlu0 %v926_v63  ;;  %v931_v40 = vmul.f32 %v926_v63, %v926_v63 }
 0x1a6   : > { %932 = vadd.xlane.f32.xlu0 %v931_v40 }
 0x22f   : > { %v928_v30 = vpop.xlane.xlu0 %927 }
 0x230   : > { %v930_v5 = vmul.f32 0.0078125, %v928_v30 }
 0x232   : > { %v935_v19 = vmul.f32 %v930_v5, %v930_v5  ;;  %v947_v39 = vsub.f32 %v926_v63, %v930_v5 }
 0x233   : > { %v933_v6 = vpop.xlane.xlu0 %932 }
 0x234   : > { %v934_v20 = vmul.f32 0.0078125, %v933_v6 }
 0x236   : > { %v936_v28 = vsub.f32 %v934_v20, %v935_v19 }
 0x238   : > { %v937_v34 = vmax.f32 %v936_v28, 0.0 }
 0x23a   : > { %v938_v52 = vadd.f32 1e-12, %v937_v34 }
 0x23c   : > { %1598 = vrsqrt.f32 %v938_v52 }
 0x246   : > { %v1599_v35 = vpop.eup %1598 }
 0x247   : > { %v946_v55 = vmul.f32 %v1599_v35, %v1062_v54 }
 0x249   : > { %v948_v42 = vmul.f32 %v947_v39, %v946_v55 }
 0x24b   : > { %v955_v56 = vadd.f32 %v1063_v36, %v948_v42 }
 0x24d   : > { %956 = vst [vmem:[%s254_s12] sm:$0xff] %v955_v56 }
 0x24e   : > { %1671 = shalt.err (!%p1668_p7)
}
 0x24f   : > { %s1672_s16 = scalar_lea.hbm %s2183_s28, 128  ;;  %s1676_s6 = scalar_lea.hbm %s2232_s5, 256 }
 0x250   : > { %p1673_p9 = scmp.ne.s32.totalorder %s2183_s28, %s1672_s16  ;;  %p1677_p0 = scmp.lt.u32.totalorder %s2183_s28, %s2232_s5 }
 0x251   : > { %p1678_p11 = scmp.lt.u32.totalorder %s1676_s6, %s1672_s16  ;;  %p1680_p4 = scmp.lt.u32.totalorder %s1672_s16, %s2183_s28 }
 0x252   : > { %p1674_p2 = pnand %p1673_p9, %p1859_p12 }
 0x253   : > { %p1679_p1 = por %p1678_p11, %p1677_p0 }
 0x254   : > { %p1675_p5 = pneg %p1674_p2 }
 0x255   : > { %p1681_p6 = por %p1680_p4, %p1679_p1 }
 0x257   : > { %p1682_p8 = pnand %p1681_p6, %p1675_p5 }
 0x259   : > { %1685 = shalt.err (!%p1682_p8)
}
 0x25a   : > { %1540 = dma.vmem_to_hbm [thread:$0]  (%p1859_p12), %s2185_s10, 128, %s2183_s28, %s958_s23  }
 0x25b PF: > { %s983_s11 = sand.u32 1, %s1716_s18   ;;  %p2247_p10 = scmp.ne.s32.totalorder %s2237_s25, 0 }
 0x25c   : > { %p2248_p13 = scmp.ge.s32.totalorder %s1728_s21, 2  ;;  %s984_s12 = scalar_lea.sflag [#allocation4], %s983_s11 }
 0x25e   : > { %p1551_p3 = pnand %p2248_p13, %p2247_p10 }
 0x260   : > { %1711 = dma.done.wait (!%p1551_p3), %s984_s12, 128  }
 0x261   : > { %1713 = vsyncadd (!%p1551_p3), %s984_s12, 4294967168  ;;  %p19_p7 = scmp.ge.s32.totalorder %s1824_s30, 4   ;;  %s2249_s18 = smov %s1720_s19 }
 0x262   : > { %s2250_s19 = smov %s1724_s20  ;;  %s2251_s20 = smov %s1855_s8 }
 0x263   : > { %s2252_s21 = smov %s1824_s30  ;;  %21 = sbr.rel (!%p19_p7) target bundleno = 6 (0x6), region = 89 }
 0x26a   :  { %989 = vsyncpa [#allocation3], 1 }
 0x26b   :  { %991 = vsyncpa [#allocation3 + $0x1], 1 }
 0x26c   :  { %992 = vsyncpa [#allocation6], 1 }
 0x26d   :  { %993 = vsyncpa [#allocation4], 1 }
 0x26e   :  { %995 = vsyncpa [#allocation4 + $0x1], 1 }

</bundles_post_ra>
